<compile_context>
chip_gen: v7x
topology: tpu7x:2x2x1
jax: 0.10.0
libtpu: 0.0.40
codegen_flags: <defaults>
</compile_context>

<pallas_src>
import jax
import jax.numpy as jnp
from jax.experimental import pallas as pl
from jax.experimental.pallas import tpu as pltpu

_LANES = 128                           # lane width: last dim for dense vld/vst
_SUBLANES = 8                          # sublane granularity (second-minor alignment)
_TARGET_BLOCK_BYTES = 2 * 1024 * 1024  # ~2 MiB/block; x2 bufs x (in+out) = 8 MiB VMEM
_MIN_SPLIT_BYTES = 256 * 1024          # above this, force >= 2 blocks (v7x megacore)


def _cdiv(a, b):
    return -(-a // b)


def _softplus_kernel(x_ref, o_ref):
    # Stable softplus: log(1 + exp(x)) == max(x, 0) + log1p(exp(-|x|)).
    # max/abs/neg/add are VPU ops; exp/log1p run on the EUP slot - both have
    # slack relative to HBM bandwidth, so the kernel stays purely DMA-bound.
    x = x_ref[...].astype(jnp.float32)
    y = jnp.maximum(x, 0.0) + jnp.log1p(jnp.exp(-jnp.abs(x)))
    o_ref[...] = y.astype(o_ref.dtype)


def _pick_blocking(n_units, unit_bytes, align_units):
    """Choose (block_units, num_blocks) along the leading (blocked) axis.

    - Small inputs: one full-array block (always layout-legal), grid=(1,).
    - Otherwise: >= 2 balanced blocks (both v7x TensorCores get work), each
      capped at ~_TARGET_BLOCK_BYTES and aligned to `align_units`.  A ragged
      last block is handled by Pallas boundary masking (clipped DMAs), so no
      HBM-side padding is ever needed.
    """
    min_split_units = max(_MIN_SPLIT_BYTES // unit_bytes, align_units)
    if n_units <= min_split_units:
        return n_units, 1
    max_units = max(_TARGET_BLOCK_BYTES // unit_bytes, align_units)
    max_units = (max_units // align_units) * align_units
    half = _cdiv(n_units, 2)
    half = _cdiv(half, align_units) * align_units
    block_units = min(max_units, half)
    return block_units, _cdiv(n_units, block_units)


def _launch(x_arr, block_leading, num_blocks):
    """Run the softplus kernel over `x_arr`, blocked along its leading axis."""
    ndim = x_arr.ndim
    block_shape = (block_leading,) + x_arr.shape[1:]
    index_map = lambda i: (i,) + (0,) * (ndim - 1)
    return pl.pallas_call(
        _softplus_kernel,
        out_shape=jax.ShapeDtypeStruct(x_arr.shape, x_arr.dtype),
        grid_spec=pltpu.PrefetchScalarGridSpec(
            num_scalar_prefetch=0,
            grid=(num_blocks,),
            in_specs=[pl.BlockSpec(block_shape, index_map)],
            out_specs=pl.BlockSpec(block_shape, index_map),
        ),
        # Single grid axis marked "parallel": >= 2 blocks shard across the two
        # v7x TensorCores (no-op on single-TC v5e/v6e).
        compiler_params=pltpu.CompilerParams(
            dimension_semantics=("parallel",),
        ),
    )(x_arr)


def complex_softmax(x: jnp.ndarray) -> jnp.ndarray:
    """Elementwise log(1 + exp(x)) on an arbitrarily-shaped tensor (ComplexSoftmax.forward)."""
    # TODO(synk): complex-dtype inputs (implied by the class name) are not handled;
    # this implements the real-valued forward log(1 + exp(x)).
    orig_shape = x.shape
    total = x.size
    if total == 0:
        return x

    itemsize = jnp.dtype(x.dtype).itemsize
    x_flat = jnp.reshape(x, (total,))  # free: contiguous row-major view

    if total % _LANES == 0:
        # Common case: view as (rows, 128) so every vld/vst is a full unmasked
        # vreg and every HBM DMA is fully contiguous and lane-dense.
        rows = total // _LANES
        x2d = jnp.reshape(x_flat, (rows, _LANES))
        block_rows, num_blocks = _pick_blocking(
            rows, unit_bytes=_LANES * itemsize, align_units=_SUBLANES)
        out = _launch(x2d, block_rows, num_blocks)
    else:
        # Unaligned total: stream the rank-1 array directly; the ragged last
        # block is masked by Pallas.  Avoids the pad + slice HBM passes (each
        # a full extra read+write) the previous version paid here.
        block_elems, num_blocks = _pick_blocking(
            total, unit_bytes=itemsize, align_units=_SUBLANES * _LANES)
        out = _launch(x_flat, block_elems, num_blocks)

    return jnp.reshape(out, orig_shape)


if __name__ == "__main__":
    key = jax.random.PRNGKey(0)
    k1, k2, k3, k4 = jax.random.split(key, 4)

    def ref_softplus(x):
        # Numerically stable reference for log(1 + exp(x)).
        return jnp.logaddexp(x, 0.0).astype(x.dtype)

    # 1) Module-consistent NCHW activation input: aligned total (2048 elems),
    #    single-block (rows, 128) path.
    x1 = jax.random.normal(k1, (2, 4, 16, 16), dtype=jnp.float32)
    y1 = jax.block_until_ready(complex_softmax(x1))
    assert y1.shape == x1.shape and y1.dtype == x1.dtype
    assert jnp.allclose(y1, ref_softplus(x1), atol=1e-6, rtol=1e-6)

    # 2) Larger aligned input with large magnitudes: multi-block path
    #    (2 balanced blocks -> both v7x TCs) + numerical-stability check.
    x2 = 40.0 * jax.random.normal(k2, (2, 4, 128, 130), dtype=jnp.float32)
    y2 = jax.block_until_ready(complex_softmax(x2))
    assert y2.shape == x2.shape and y2.dtype == x2.dtype
    assert bool(jnp.all(jnp.isfinite(y2)))
    assert jnp.allclose(y2, ref_softplus(x2), atol=1e-5, rtol=1e-6)

    # 3) Small unaligned total (1800 % 128 != 0): rank-1 single-block path,
    #    no HBM pad/slice passes.
    x3 = jax.random.normal(k3, (2, 4, 15, 15), dtype=jnp.float32)
    y3 = jax.block_until_ready(complex_softmax(x3))
    assert y3.shape == x3.shape and y3.dtype == x3.dtype
    assert jnp.allclose(y3, ref_softplus(x3), atol=1e-6, rtol=1e-6)

    # 4) Larger unaligned total (270900 elems): rank-1 multi-block path with a
    #    ragged, Pallas-masked last block.
    x4 = jax.random.normal(k4, (1, 3, 300, 301), dtype=jnp.float32)
    y4 = jax.block_until_ready(complex_softmax(x4))
    assert y4.shape == x4.shape and y4.dtype == x4.dtype
    assert jnp.allclose(y4, ref_softplus(x4), atol=1e-6, rtol=1e-6)

    print("KERNEL_OK")
</pallas_src>

<mosaic_0001>
module attributes {stable_mosaic.version = 11 : i64} {
  func.func @_softplus_kernel(%arg0: i32, %arg1: memref<16x128xf32, #tpu.memory_space<vmem>>, %arg2: memref<16x128xf32, #tpu.memory_space<vmem>>) attributes {dimension_semantics = [#tpu.dimension_semantics<parallel>], iteration_bounds = array<i64: 1>, scalar_prefetch = 0 : i64, scratch_operands = 0 : i64, tpu.core_type = #tpu.core_type<tc>, window_params = [{transform_indices = @transform_0, window_bounds = array<i64: 16, 128>}, {transform_indices = @transform_1, window_bounds = array<i64: 16, 128>}]} {
    %c0 = arith.constant 0 : index
    %c0_0 = arith.constant 0 : index
    %0 = vector.load %arg1[%c0, %c0_0] : memref<16x128xf32, #tpu.memory_space<vmem>>, vector<16x128xf32>
    %cst = arith.constant 0.000000e+00 : f32
    %1 = vector.broadcast %cst : f32 to vector<16x128xf32>
    %2 = arith.maximumf %0, %1 : vector<16x128xf32>
    %3 = math.absf %0 : vector<16x128xf32>
    %cst_1 = arith.constant 0.000000e+00 : f32
    %4 = vector.broadcast %cst_1 : f32 to vector<16x128xf32>
    %5 = arith.subf %4, %3 : vector<16x128xf32>
    %6 = math.exp %5 : vector<16x128xf32>
    %7 = math.log1p %6 : vector<16x128xf32>
    %8 = arith.addf %2, %7 : vector<16x128xf32>
    %c0_2 = arith.constant 0 : index
    %c0_3 = arith.constant 0 : index
    %9 = vector.load %arg2[%c0_2, %c0_3] : memref<16x128xf32, #tpu.memory_space<vmem>>, vector<16x128xf32>
    tpu.vector_store %arg2[%c0_2, %c0_3], %8 {strides = array<i32>} : memref<16x128xf32, #tpu.memory_space<vmem>>, vector<16x128xf32>,
    return
  }
  func.func @transform_0(%arg0: i32) -> (i32, i32) {
    %c0_i32 = arith.constant 0 : i32
    %c0_i32_0 = arith.constant 0 : i32
    return %arg0, %c0_i32 : i32, i32
  }
  func.func @transform_1(%arg0: i32) -> (i32, i32) {
    %c0_i32 = arith.constant 0 : i32
    %c0_i32_0 = arith.constant 0 : i32
    return %arg0, %c0_i32 : i32, i32
  }
}

</mosaic_0001>

<bundles_post_ra>
// kernel: tpu_custom_call.1
= control target key start
LH: loop header
LB: loop body
LE: loop exit
PB: predicated region body
PF: predicated region fallthrough
CT: control target
= control target key end

     0   :  { %6 = vsyncpa [#allocation3], 0  ;;  %s178_s0 = inlined_call_operand.hbm [shape: f32[16,128], index: 0, kind: input, shape index: {}]   ;;  %s179_s1 = inlined_call_operand.hbm [shape: f32[16,128], index: 1, kind: output, shape index: {}]  }
   0x1   :  { %7 = vsyncpa [#allocation4], 0  ;;  %s134_s6 = smov [#allocation2]   ;;  %s86_s10 = scalar_lea.hbm %s178_s0, 256 }
   0x2   :  { %s13_s7 = sshll.u32 %s134_s6, 4  ;;  %p87_p0 = scmp.ne.s32.totalorder %s178_s0, %s86_s10  ;;  %s14_s7 = int_to_ptr.vmem [resolvable:$true] %s13_s7 }
   0x3   :  { %p90_p1 = scmp.lt.u32.totalorder %s86_s10, %s178_s0 }
   0x5   :  { %p92_p2 = pnand %p90_p1, %p87_p0 }
   0x7   :  { %95 = shalt.err (!%p92_p2)
}
   0x8   :  { %s96_s15 = scalar_lea.vmem %s14_s7, 256  ;;  %p101_p4 = scmp.lt.s32.totalorder %s14_s7, %s14_s7 }
   0x9   :  { %p97_p3 = scmp.ne.s32.totalorder %s14_s7, %s96_s15  ;;  %p102_p5 = scmp.lt.s32.totalorder %s96_s15, %s96_s15 }
   0xb   :  { %p103_p6 = por %p102_p5, %p101_p4 }
   0xd   :  { %p104_p7 = pnand %p103_p6, %p97_p3 }
   0xf   :  { %107 = shalt.err (!%p104_p7)
}
  0x10   :  { %s135_s16 = smov 128   ;;  %s136_s17 = smov 8  }
  0x11   :  { %19 = dma.hbm_to_vmem [thread:$0]  %s178_s0, 256, %s14_s7, [#allocation3], %s135_s16, %s135_s16, %s136_s17  }
  0x12   :  { %130 = dma.done.wait [#allocation3], 256  }
  0x13   :  { %131 = vsyncadd [#allocation3], 4294967040  ;;  %v23_v0 = vld [vmem:[#allocation2] sm:$0xff]  ;;  %v24_v1 = vld [vmem:[#allocation2 + $0x8] sm:$0xff]  ;;  %s137_s0 = smov [#allocation5]  }
  0x14   :  { %v27_v2 = vand.u32 2147483647, %v23_v0  ;;  %v28_v3 = vand.u32 2147483647, %v24_v1  ;;  %v25_v20 = vmax.f32 %v23_v0, 0.0  ;;  %v26_v24 = vmax.f32 %v24_v1, 0.0 }
  0x15   :  { %s62_s20 = sshll.u32 %s137_s0, 4  ;;  %s63_s20 = int_to_ptr.vmem [resolvable:$true] %s62_s20 }
  0x16   :  { %v29_v4 = vsub.f32 0.0, %v27_v2  ;;  %v30_v5 = vsub.f32 0.0, %v28_v3  ;;  %s108_s21 = scalar_lea.vmem %s63_s20, 256  ;;  %p113_p9 = scmp.lt.s32.totalorder %s63_s20, %s63_s20 }
  0x17   :  { %p109_p8 = scmp.ne.s32.totalorder %s63_s20, %s108_s21  ;;  %p114_p10 = scmp.lt.s32.totalorder %s108_s21, %s108_s21 }
  0x18   :  { %v31_v6 = vmul.f32 1.442695, %v29_v4  ;;  %v33_v7 = vmul.f32 1.442695, %v30_v5 }
  0x19   :  { %p115_p11 = por %p114_p10, %p113_p9 }
  0x1a   :  { %78 = vpow2.f32 %v31_v6 }
  0x1b   :  { %80 = vpow2.f32 %v33_v7  ;;  %p116_p12 = pnand %p115_p11, %p109_p8 }
  0x24   :  { %v79_v8 = vpop.eup %78 }
  0x25   :  { %v81_v9 = vpop.eup %80  ;;  %v35_v10 = vadd.f32 1.0, %v79_v8  ;;  %v38_v12 = vmul.f32 -0.5, %v79_v8  ;;  %v41_v15 = vand.u32 2147483647, %v79_v8 }
  0x26   :  { %v44_v11 = vadd.f32 1.0, %v81_v9  ;;  %v47_v13 = vmul.f32 -0.5, %v81_v9  ;;  %v50_v17 = vand.u32 2147483647, %v81_v9 }
  0x27   :  { %82 = vlog2.f32 %v35_v10  ;;  %v39_v14 = vadd.f32 1.0, %v38_v12  ;;  %vm42_vm0 = vcmp.lt.f32.partialorder %v41_v15, 0.0004427343 }
  0x28   :  { %84 = vlog2.f32 %v44_v11  ;;  %v48_v16 = vadd.f32 1.0, %v47_v13  ;;  %vm51_vm1 = vcmp.lt.f32.partialorder %v50_v17, 0.0004427343 }
  0x29   :  { %v40_v18 = vmul.f32 %v79_v8, %v39_v14 }
  0x2a   :  { %v49_v21 = vmul.f32 %v81_v9, %v48_v16 }
  0x31   :  { %v83_v19 = vpop.eup %82 }
  0x32   :  { %v85_v22 = vpop.eup %84  ;;  %v37_v23 = vmul.f32 0.6931472, %v83_v19 }
  0x33   :  { %v46_v25 = vmul.f32 0.6931472, %v85_v22 }
  0x34   :  { %v43_v26 = vsel %vm42_vm0, %v40_v18, %v37_v23 }
  0x35   :  { %v53_v27 = vadd.f32 %v43_v26, %v25_v20  ;;  %v52_v28 = vsel %vm51_vm1, %v49_v21, %v46_v25 }
  0x36   :  { %v54_v29 = vadd.f32 %v52_v28, %v26_v24 }
  0x37   :  { %55 = vst [vmem:[#allocation5] sm:$0xff] %v53_v27 }
  0x38   :  { %56 = vst [vmem:[#allocation5 + $0x8] sm:$0xff] %v54_v29 }
  0x39   :  { %119 = shalt.err (!%p116_p12)
}
  0x3a   :  { %s120_s24 = scalar_lea.hbm %s179_s1, 256 }
  0x3b   :  { %p121_p13 = scmp.ne.s32.totalorder %s179_s1, %s120_s24  ;;  %p124_p0 = scmp.lt.u32.totalorder %s120_s24, %s179_s1 }
  0x3d   :  { %p126_p1 = pnand %p124_p0, %p121_p13 }
  0x3f   :  { %129 = shalt.err (!%p126_p1)
}
  0x40   :  { %68 = dma.vmem_to_hbm [thread:$0]  %s63_s20, 256, %s179_s1, [#allocation4], %s135_s16, %s135_s16, %s136_s17  }
  0x41   :  { %132 = dma.done.wait [#allocation4], 256  }
  0x42   :  { %133 = vsyncadd [#allocation4], 4294967040 }
  0x43   :  { %72 = vsyncpa [#allocation3], 1 }
  0x44   :  { %73 = vsyncpa [#allocation4], 1 }

</bundles_post_ra>
